<compile_context>
chip_gen: v5e
topology: v5e:2x2
jax: 0.10.0
libtpu: 0.0.40
codegen_flags: <defaults>
</compile_context>

<pallas_src>
import math

import jax
import jax.numpy as jnp
from jax.experimental import pallas as pl
from jax.experimental.pallas import tpu as pltpu

_EPS = 0.01              # sinkhorn epsilon (default of sinkhorn_img_loss)
_INV_EPS = 1.0 / _EPS    # fold the /eps into a multiply


def _lse(a, axis):
    """Numerically stable logsumexp (matches torch.logsumexp), keepdims=True."""
    m = jnp.max(a, axis=axis, keepdims=True)
    return m + jnp.log(jnp.sum(jnp.exp(a - m), axis=axis, keepdims=True))


def _make_kernel(B, Hp, H4pad, Wpad):
    # Hp = H + 2 (conv output rows), H4pad = roundup(H + 4, 8) padded rows per
    # image, Wpad = lane-dense padded width (multiple of 128, >= W + 4).
    Rtot = B * H4pad
    sh_c1, sh_c2 = Wpad - 1, Wpad - 2     # roll: out[:, j] = s[:, j+1] / j+2
    sh_r1, sh_r2 = Rtot - 1, Rtot - 2     # roll: out[r, :] = s[r+1, :] / r+2
    log_mu = math.log(1.0 / Hp + 1e-8)    # log(mu + 1e-8), mu = nu = 1/Hp
    unroll = B <= 2                       # full unroll only for tiny loops
    dnums = (((1,), (1,)), ((), ()))      # contract last dims, no batch dims

    def laplacian(src_ref, dst_ref):
        # Laplacian [[1,1,1],[1,-8,1],[1,1,1]] == box3x3 - 9*center, with all
        # shifts as XLU rolls.  Wrap-around columns/rows land in zero padding
        # (or in rows never read), so valid conv rows/cols are exact and the
        # extra lanes (>= W+2) stay exactly 0.
        s = src_ref[...]                              # [Rtot, Wpad]
        s1 = pltpu.roll(s, sh_c1, 1)                  # s1[r, c] = s[r, c+1]
        s2 = pltpu.roll(s, sh_c2, 1)                  # s2[r, c] = s[r, c+2]
        h = s + s1 + s2                               # horizontal 3-tap
        box = h + pltpu.roll(h, sh_r1, 0) + pltpu.roll(h, sh_r2, 0)
        dst_ref[...] = box - 9.0 * pltpu.roll(s1, sh_r1, 0)

    def kernel(x_ref, y_ref, o_ref, cx_ref, cy_ref):
        # Conv once per grid step over the whole batch slab (hoisted).
        laplacian(x_ref, cx_ref)
        laplacian(y_ref, cy_ref)

        ones8 = jnp.ones((8, Wpad), jnp.float32)      # hoisted broadcast

        def per_image(b, row_acc):
            r0 = pl.multiple_of(b * H4pad, 8)         # sublane-aligned start
            xe = cx_ref[pl.ds(r0, Hp), :]             # conv output, [Hp, Wpad]
            ye = cy_ref[pl.ds(r0, Hp), :]

            # cost_matrix(x, y, p=2) over rows, on the MXU:
            #   C_ij = ||xe_i||^2 + ||ye_j||^2 - 2 <xe_i, ye_j>
            x2 = jnp.sum(xe * xe, axis=-1, keepdims=True)          # [Hp, 1]
            y2r = jax.lax.dot_general(                              # [8, Hp]
                ones8, ye * ye, dnums,
                preferred_element_type=jnp.float32,
                precision=jax.lax.Precision.HIGHEST)[0:1, :]        # [1, Hp]
            G = jax.lax.dot_general(                                # [Hp, Hp]
                xe, ye, dnums,
                preferred_element_type=jnp.float32,
                precision=jax.lax.Precision.HIGHEST)
            C = jnp.maximum(x2 + y2r - 2.0 * G, 0.0)

            # Exactly one Sinkhorn iteration (bug-compatible with the
            # reference's u1 = u aliasing + err.item() early break).
            lse_r = _lse(-C * _INV_EPS, axis=-1)                    # [Hp, 1]
            u = _EPS * (log_mu - lse_r)                             # [Hp, 1]
            lse_c = _lse((u - C) * _INV_EPS, axis=0)                # [1, Hp]
            v = _EPS * (log_mu - lse_c)                             # [1, Hp]
            pi = jnp.exp((u + v - C) * _INV_EPS)
            # partial (sublane) reduce only; full reduce happens once at the end
            return row_acc + jnp.sum(pi * C, axis=0, keepdims=True)

        row_acc = jax.lax.fori_loop(0, B, per_image,
                                    jnp.zeros((1, Hp), jnp.float32),
                                    unroll=unroll)

        # one lane-dense (8,128) tile per batch tile; wrapper reads [t, 0, 0]
        o_ref[...] = jnp.zeros((1, 8, 128), jnp.float32) + jnp.sum(row_acc)

    return kernel


def l1_edge_w_loss(x, y, block_b=8):
    """x, y: [N, 3, H, W] float32 (NCHW). Returns scalar loss (== module output)."""
    N, C, H, W = x.shape
    assert C == 3, "conv weight has 3 input channels"
    assert N >= 2, "N == 1 (.squeeze() quirk of the reference) is unsupported"

    Hp = H + 2                                        # conv output rows
    H4pad = ((H + 4 + 7) // 8) * 8                    # padded rows per image
    Wpad = max(128, ((W + 4 + 127) // 128) * 128)     # lane-dense padded width

    # --- choose the batch tile B -------------------------------------------
    # VMEM per image ~ 6 planes (2 inputs x 2 pipeline buffers + 2 conv scratch)
    # + per-image intermediates (xe/ye slices, G/C/pi).  Budget 40 MiB so it
    # fits v7x's 64 MiB physical VMEM and a raised limit on v5e/v6e.
    plane_bytes = H4pad * Wpad * 4
    per_img_tmp = (2 * Hp * Wpad + 4 * Hp * Hp) * 4
    budget = 40 * 1024 * 1024
    b_fit = max(1, (budget - per_img_tmp) // (6 * plane_bytes))
    b_grid = -(-N // 4)                               # target >= ~4 grid steps
    B = int(max(1, min(block_b, b_fit, b_grid)))
    Nt = -(-N // B)                                   # number of batch tiles
    Npad = Nt * B                                     # zero images contribute 0
    Rtot = B * H4pad

    est_vmem = 6 * B * plane_bytes + per_img_tmp + (1 << 20)
    vmem_limit = int(min(112 * 1024 * 1024, max(48 * 1024 * 1024, est_vmem)))

    def prep(a):
        # channel sum (exact: identical per-channel kernels) + zero padding
        # (2 rows/cols for conv padding=2, then up to Npad / H4pad / Wpad),
        # flattened to a 2-D lane-dense slab.
        # TODO(synk): fuse this into the pallas_call inputs to avoid the
        # padded HBM round trip (allow_input_fusion / in-kernel padding).
        s = jnp.sum(a.astype(jnp.float32), axis=1)                    # [N,H,W]
        s = jnp.pad(s, ((0, Npad - N), (2, H4pad - H - 2), (2, Wpad - W - 2)))
        return s.reshape(Npad * H4pad, Wpad)

    xp, yp = prep(x), prep(y)

    out = pl.pallas_call(
        _make_kernel(B, Hp, H4pad, Wpad),
        out_shape=jax.ShapeDtypeStruct((Nt, 8, 128), jnp.float32),
        grid_spec=pltpu.PrefetchScalarGridSpec(
            num_scalar_prefetch=0,
            grid=(Nt,),
            in_specs=[
                pl.BlockSpec((Rtot, Wpad), lambda t: (t, 0)),
                pl.BlockSpec((Rtot, Wpad), lambda t: (t, 0)),
            ],
            out_specs=pl.BlockSpec((1, 8, 128), lambda t: (t, 0, 0)),
            scratch_shapes=[
                pltpu.VMEM((Rtot, Wpad), jnp.float32),   # conv(x) slab
                pltpu.VMEM((Rtot, Wpad), jnp.float32),   # conv(y) slab
            ],
        ),
        compiler_params=pltpu.CompilerParams(
            dimension_semantics=("parallel",),   # batch tiles are independent
            vmem_limit_bytes=vmem_limit,
        ),
    )(xp, yp)

    # final loss = sum over all images of the per-image transport cost
    return jnp.sum(out[:, 0, 0])


if __name__ == "__main__":
    key = jax.random.PRNGKey(0)
    kx, ky = jax.random.split(key)
    N, C, H, W = 2, 3, 16, 16
    x = jax.random.normal(kx, (N, C, H, W), dtype=jnp.float32)
    y = jax.random.normal(ky, (N, C, H, W), dtype=jnp.float32)

    loss = jax.jit(l1_edge_w_loss)(x, y)
    jax.block_until_ready(loss)
    assert bool(jnp.isfinite(loss)), "loss is not finite"
    print("KERNEL_OK")
</pallas_src>

<mosaic_0001>
module attributes {stable_mosaic.version = 11 : i64} {
  func.func @kernel(%arg0: i32, %arg1: memref<24x128xf32, #tpu.memory_space<vmem>>, %arg2: memref<24x128xf32, #tpu.memory_space<vmem>>, %arg3: memref<1x8x128xf32, #tpu.memory_space<vmem>>, %arg4: memref<24x128xf32, #tpu.memory_space<vmem>>, %arg5: memref<24x128xf32, #tpu.memory_space<vmem>>) attributes {dimension_semantics = [#tpu.dimension_semantics<parallel>], iteration_bounds = array<i64: 2>, scalar_prefetch = 0 : i64, scratch_operands = 2 : i64, tpu.core_type = #tpu.core_type<tc>, window_params = [{transform_indices = @transform_0, window_bounds = array<i64: 24, 128>}, {transform_indices = @transform_1, window_bounds = array<i64: 24, 128>}, {transform_indices = @transform_2, window_bounds = array<i64: 1, 8, 128>}]} {
    %c0 = arith.constant 0 : index
    %c0_0 = arith.constant 0 : index
    %0 = vector.load %arg1[%c0, %c0_0] : memref<24x128xf32, #tpu.memory_space<vmem>>, vector<24x128xf32>
    %c127_i32 = arith.constant 127 : i32
    %1 = tpu.dynamic_rotate %0 by %c127_i32 dim 1 : vector<24x128xf32>, i32 -> vector<24x128xf32>
    %c126_i32 = arith.constant 126 : i32
    %2 = tpu.dynamic_rotate %0 by %c126_i32 dim 1 : vector<24x128xf32>, i32 -> vector<24x128xf32>
    %3 = arith.addf %0, %1 : vector<24x128xf32>
    %4 = arith.addf %3, %2 : vector<24x128xf32>
    %c23_i32 = arith.constant 23 : i32
    %5 = tpu.dynamic_rotate %4 by %c23_i32 dim 0 : vector<24x128xf32>, i32 -> vector<24x128xf32>
    %6 = arith.addf %4, %5 : vector<24x128xf32>
    %c22_i32 = arith.constant 22 : i32
    %7 = tpu.dynamic_rotate %4 by %c22_i32 dim 0 : vector<24x128xf32>, i32 -> vector<24x128xf32>
    %8 = arith.addf %6, %7 : vector<24x128xf32>
    %c23_i32_1 = arith.constant 23 : i32
    %9 = tpu.dynamic_rotate %1 by %c23_i32_1 dim 0 : vector<24x128xf32>, i32 -> vector<24x128xf32>
    %cst = arith.constant 9.000000e+00 : f32
    %10 = vector.broadcast %cst : f32 to vector<24x128xf32>
    %11 = arith.mulf %10, %9 : vector<24x128xf32>
    %12 = arith.subf %8, %11 : vector<24x128xf32>
    %c0_2 = arith.constant 0 : index
    %c0_3 = arith.constant 0 : index
    %13 = vector.load %arg4[%c0_2, %c0_3] : memref<24x128xf32, #tpu.memory_space<vmem>>, vector<24x128xf32>
    tpu.vector_store %arg4[%c0_2, %c0_3], %12 {strides = array<i32>} : memref<24x128xf32, #tpu.memory_space<vmem>>, vector<24x128xf32>,
    %c0_4 = arith.constant 0 : index
    %c0_5 = arith.constant 0 : index
    %14 = vector.load %arg2[%c0_4, %c0_5] : memref<24x128xf32, #tpu.memory_space<vmem>>, vector<24x128xf32>
    %c127_i32_6 = arith.constant 127 : i32
    %15 = tpu.dynamic_rotate %14 by %c127_i32_6 dim 1 : vector<24x128xf32>, i32 -> vector<24x128xf32>
    %c126_i32_7 = arith.constant 126 : i32
    %16 = tpu.dynamic_rotate %14 by %c126_i32_7 dim 1 : vector<24x128xf32>, i32 -> vector<24x128xf32>
    %17 = arith.addf %14, %15 : vector<24x128xf32>
    %18 = arith.addf %17, %16 : vector<24x128xf32>
    %c23_i32_8 = arith.constant 23 : i32
    %19 = tpu.dynamic_rotate %18 by %c23_i32_8 dim 0 : vector<24x128xf32>, i32 -> vector<24x128xf32>
    %20 = arith.addf %18, %19 : vector<24x128xf32>
    %c22_i32_9 = arith.constant 22 : i32
    %21 = tpu.dynamic_rotate %18 by %c22_i32_9 dim 0 : vector<24x128xf32>, i32 -> vector<24x128xf32>
    %22 = arith.addf %20, %21 : vector<24x128xf32>
    %c23_i32_10 = arith.constant 23 : i32
    %23 = tpu.dynamic_rotate %15 by %c23_i32_10 dim 0 : vector<24x128xf32>, i32 -> vector<24x128xf32>
    %cst_11 = arith.constant 9.000000e+00 : f32
    %24 = vector.broadcast %cst_11 : f32 to vector<24x128xf32>
    %25 = arith.mulf %24, %23 : vector<24x128xf32>
    %26 = arith.subf %22, %25 : vector<24x128xf32>
    %c0_12 = arith.constant 0 : index
    %c0_13 = arith.constant 0 : index
    %27 = vector.load %arg5[%c0_12, %c0_13] : memref<24x128xf32, #tpu.memory_space<vmem>>, vector<24x128xf32>
    tpu.vector_store %arg5[%c0_12, %c0_13], %26 {strides = array<i32>} : memref<24x128xf32, #tpu.memory_space<vmem>>, vector<24x128xf32>,
    %cst_14 = arith.constant 1.000000e+00 : f32
    %28 = vector.broadcast %cst_14 : f32 to vector<8x128xf32>
    %cst_15 = arith.constant 0.000000e+00 : f32
    %29 = vector.broadcast %cst_15 : f32 to vector<1x18xf32>
    %c0_i32 = arith.constant 0 : i32
    %c24_i32 = arith.constant 24 : i32
    %30 = arith.muli %c0_i32, %c24_i32 : i32
    %31 = tpu.assume_multiple %30, 8 : i32
    %32 = arith.index_cast %31 : i32 to index
    %c0_16 = arith.constant 0 : index
    %33 = vector.load %arg4[%32, %c0_16] : memref<24x128xf32, #tpu.memory_space<vmem>>, vector<18x128xf32>
    %34 = arith.index_cast %31 : i32 to index
    %c0_17 = arith.constant 0 : index
    %35 = vector.load %arg5[%34, %c0_17] : memref<24x128xf32, #tpu.memory_space<vmem>>, vector<18x128xf32>
    %36 = arith.mulf %33, %33 : vector<18x128xf32>
    %cst_18 = arith.constant dense<0.000000e+00> : vector<18xf32>
    %37 = vector.multi_reduction <add>, %36, %cst_18 [1] : vector<18x128xf32> to vector<18xf32>
    %38 = vector.shape_cast %37 : vector<18xf32> to vector<18x1xf32>
    %39 = arith.mulf %35, %35 : vector<18x128xf32>
    %cst_19 = arith.constant dense<0.000000e+00> : vector<8x18xf32>
    %40 = tpu.matmul %28, %39, %cst_19 {dimension_numbers = #tpu.dot_dimension_numbers<[1], [1], [0], [0], [0, 0, 1, 0], [], []>, precision = #tpu.contract_precision<fp32>} : vector<8x128xf32>, vector<18x128xf32>, vector<8x18xf32> -> vector<8x18xf32>
    %41 = vector.extract_strided_slice %40 {offsets = [0, 0], sizes = [1, 18], strides = [1, 1]} : vector<8x18xf32> to vector<1x18xf32>
    %cst_20 = arith.constant dense<0.000000e+00> : vector<18x18xf32>
    %42 = tpu.matmul %33, %35, %cst_20 {dimension_numbers = #tpu.dot_dimension_numbers<[1], [1], [0], [0], [0, 0, 1, 0], [], []>, precision = #tpu.contract_precision<fp32>} : vector<18x128xf32>, vector<18x128xf32>, vector<18x18xf32> -> vector<18x18xf32>
    %43 = vector.broadcast %38 : vector<18x1xf32> to vector<18x18xf32>
    %44 = vector.broadcast %41 : vector<1x18xf32> to vector<18x18xf32>
    %45 = arith.addf %43, %44 : vector<18x18xf32>
    %cst_21 = arith.constant 2.000000e+00 : f32
    %46 = vector.broadcast %cst_21 : f32 to vector<18x18xf32>
    %47 = arith.mulf %46, %42 : vector<18x18xf32>
    %48 = arith.subf %45, %47 : vector<18x18xf32>
    %cst_22 = arith.constant 0.000000e+00 : f32
    %49 = vector.broadcast %cst_22 : f32 to vector<18x18xf32>
    %50 = arith.maximumf %48, %49 : vector<18x18xf32>
    %cst_23 = arith.constant 0.000000e+00 : f32
    %51 = vector.broadcast %cst_23 : f32 to vector<18x18xf32>
    %52 = arith.subf %51, %50 : vector<18x18xf32>
    %cst_24 = arith.constant 1.000000e+02 : f32
    %53 = vector.broadcast %cst_24 : f32 to vector<18x18xf32>
    %54 = arith.mulf %52, %53 : vector<18x18xf32>
    %cst_25 = arith.constant dense<0xFF800000> : vector<18xf32>
    %55 = vector.multi_reduction <maximumf>, %54, %cst_25 [1] : vector<18x18xf32> to vector<18xf32>
    %56 = vector.shape_cast %55 : vector<18xf32> to vector<18x1xf32>
    %57 = vector.broadcast %56 : vector<18x1xf32> to vector<18x18xf32>
    %58 = arith.subf %54, %57 : vector<18x18xf32>
    %59 = math.exp %58 : vector<18x18xf32>
    %cst_26 = arith.constant dense<0.000000e+00> : vector<18xf32>
    %60 = vector.multi_reduction <add>, %59, %cst_26 [1] : vector<18x18xf32> to vector<18xf32>
    %61 = vector.shape_cast %60 : vector<18xf32> to vector<18x1xf32>
    %62 = math.log %61 : vector<18x1xf32>
    %63 = arith.addf %56, %62 : vector<18x1xf32>
    %cst_27 = arith.constant -2.89037156 : f32
    %64 = vector.broadcast %cst_27 : f32 to vector<18x1xf32>
    %65 = arith.subf %64, %63 : vector<18x1xf32>
    %cst_28 = arith.constant 0.00999999977 : f32
    %66 = vector.broadcast %cst_28 : f32 to vector<18x1xf32>
    %67 = arith.mulf %66, %65 : vector<18x1xf32>
    %68 = vector.broadcast %67 : vector<18x1xf32> to vector<18x18xf32>
    %69 = arith.subf %68, %50 : vector<18x18xf32>
    %cst_29 = arith.constant 1.000000e+02 : f32
    %70 = vector.broadcast %cst_29 : f32 to vector<18x18xf32>
    %71 = arith.mulf %69, %70 : vector<18x18xf32>
    %cst_30 = arith.constant dense<0xFF800000> : vector<18xf32>
    %72 = vector.multi_reduction <maximumf>, %71, %cst_30 [0] : vector<18x18xf32> to vector<18xf32>
    %73 = vector.shape_cast %72 : vector<18xf32> to vector<1x18xf32>
    %74 = vector.broadcast %73 : vector<1x18xf32> to vector<18x18xf32>
    %75 = arith.subf %71, %74 : vector<18x18xf32>
    %76 = math.exp %75 : vector<18x18xf32>
    %cst_31 = arith.constant dense<0.000000e+00> : vector<18xf32>
    %77 = vector.multi_reduction <add>, %76, %cst_31 [0] : vector<18x18xf32> to vector<18xf32>
    %78 = vector.shape_cast %77 : vector<18xf32> to vector<1x18xf32>
    %79 = math.log %78 : vector<1x18xf32>
    %80 = arith.addf %73, %79 : vector<1x18xf32>
    %cst_32 = arith.constant -2.89037156 : f32
    %81 = vector.broadcast %cst_32 : f32 to vector<1x18xf32>
    %82 = arith.subf %81, %80 : vector<1x18xf32>
    %cst_33 = arith.constant 0.00999999977 : f32
    %83 = vector.broadcast %cst_33 : f32 to vector<1x18xf32>
    %84 = arith.mulf %83, %82 : vector<1x18xf32>
    %85 = vector.broadcast %67 : vector<18x1xf32> to vector<18x18xf32>
    %86 = vector.broadcast %84 : vector<1x18xf32> to vector<18x18xf32>
    %87 = arith.addf %85, %86 : vector<18x18xf32>
    %88 = arith.subf %87, %50 : vector<18x18xf32>
    %cst_34 = arith.constant 1.000000e+02 : f32
    %89 = vector.broadcast %cst_34 : f32 to vector<18x18xf32>
    %90 = arith.mulf %88, %89 : vector<18x18xf32>
    %91 = math.exp %90 : vector<18x18xf32>
    %92 = arith.mulf %91, %50 : vector<18x18xf32>
    %cst_35 = arith.constant dense<0.000000e+00> : vector<18xf32>
    %93 = vector.multi_reduction <add>, %92, %cst_35 [0] : vector<18x18xf32> to vector<18xf32>
    %94 = vector.shape_cast %93 : vector<18xf32> to vector<1x18xf32>
    %95 = arith.addf %29, %94 : vector<1x18xf32>
    %c1_i32 = arith.constant 1 : i32
    %cst_36 = arith.constant 0.000000e+00 : f32
    %96 = vector.broadcast %cst_36 : f32 to vector<1x8x128xf32>
    %97 = vector.shape_cast %95 : vector<1x18xf32> to vector<1x1x18xf32>
    %cst_37 = arith.constant dense<0.000000e+00> : vector<1xf32>
    %98 = vector.multi_reduction <add>, %97, %cst_37 [1, 2] : vector<1x1x18xf32> to vector<1xf32>
    %99 = vector.shape_cast %98 : vector<1xf32> to vector<1x1x1xf32>
    %100 = vector.extract %99[0, 0, 0] : f32 from vector<1x1x1xf32>
    %101 = vector.broadcast %100 : f32 to vector<1x8x128xf32>
    %102 = arith.addf %96, %101 : vector<1x8x128xf32>
    %c0_38 = arith.constant 0 : index
    %c0_39 = arith.constant 0 : index
    %c0_40 = arith.constant 0 : index
    %103 = vector.load %arg3[%c0_38, %c0_39, %c0_40] : memref<1x8x128xf32, #tpu.memory_space<vmem>>, vector<1x8x128xf32>
    tpu.vector_store %arg3[%c0_38, %c0_39, %c0_40], %102 {strides = array<i32>} : memref<1x8x128xf32, #tpu.memory_space<vmem>>, vector<1x8x128xf32>,
    return
  }
  func.func @transform_0(%arg0: i32) -> (i32, i32) {
    %c0_i32 = arith.constant 0 : i32
    %c0_i32_0 = arith.constant 0 : i32
    return %arg0, %c0_i32 : i32, i32
  }
  func.func @transform_1(%arg0: i32) -> (i32, i32) {
    %c0_i32 = arith.constant 0 : i32
    %c0_i32_0 = arith.constant 0 : i32
    return %arg0, %c0_i32 : i32, i32
  }
  func.func @transform_2(%arg0: i32) -> (i32, i32, i32) {
    %c0_i32 = arith.constant 0 : i32
    %c0_i32_0 = arith.constant 0 : i32
    %c0_i32_1 = arith.constant 0 : i32
    return %arg0, %c0_i32, %c0_i32_0 : i32, i32, i32
  }
}

</mosaic_0001>

<bundles_post_ra>
// kernel: l1_edge_w_loss.1
= control target key start
LH: loop header
LB: loop body
LE: loop exit
PB: predicated region body
PF: predicated region fallthrough
CT: control target
= control target key end

     0   :  { %s982_s9 = smov 0   ;;  %s1166_s0 = inlined_call_operand.vmem [shape: f32[48,128], index: 0, kind: input, shape index: {}]   ;;  %s1167_s1 = inlined_call_operand.vmem [shape: f32[48,128], index: 1, kind: input, shape index: {}]   ;;  %s1168_s2 = inlined_call_operand.vmem [shape: f32[2,8,128], index: 2, kind: output, shape index: {}]  }
   0x1 LB: > { %s988_s10 = sadd.s32 4294967295, %s961_s9   ;;  %p909_p0 = scmp.ge.s32.totalorder %s961_s9, 1  ;;  %s961_s9 = sphi %s982_s9, %s12_s9  }
   0x2   : > { %p124_p1 = scmp.lt.s32.totalorder %s961_s9, 3 }
   0x4   : > { %p125_p2 = pnand %p909_p0, %p124_p1 }
   0x5   : > { %s150_s11 = smul.u32 (!%p125_p2), 3, %s988_s10  ;;  %s963_s16 = smov (!%p125_p2), 126  }
   0x6   : > { %128 = sbr.rel (%p125_p2) target bundleno = 914 (0x392), region = 28  ;;  %s964_s17 = smov (!%p125_p2), 127  }
   0x7   : > { %p151_p3 = scmp.lt.s32.totalorder (!%p125_p2), %s150_s11, 5  ;;  %p162_p4 = scmp.lt.s32.totalorder (!%p125_p2), %s988_s10, 1 }
   0xb   : > { %s1170_s11 = smov (!%p151_p3, %s150_s11), 5  ;;  %v190_v8 = vlaneseq  ;;  %vm291_vm2 = vcmask 1041408   ;;  %vm710_vm3 = vcmask 146432   ;;  %vm717_vm4 = vcmask 140288   ;;  %s1172_s10 = smov (!%p162_p4, %s988_s10), 1 }
   0xc   : > { %s910_s12 = sshll.u32 %s1170_s11, 3  ;;  %vm826_vm5 = vcmask 139264   ;;  %s912_s21 = sshll.u32 %s1172_s10, 3 }
   0xd   : > { %s160_s15 = scalar_lea.vmem %s1167_s1, %s910_s12  ;;  %s154_s20 = scalar_lea.vmem %s1166_s0, %s910_s12  ;;  %v1003_v12 = vshrl.u32 %v190_v8, 7 }
   0xe   : > { %v224_v0 = vld [vmem:[%s160_s15] sm:$0xff]  ;;  %v225_v1 = vld [vmem:[%s160_s15 + $0x8] sm:$0xff]  ;;  %v226_v2 = vld [vmem:[%s160_s15 + $0x10] sm:$0xff]  ;;  %s165_s24 = scalar_lea.vmem %s1168_s2, %s912_s21 }
   0xf   : > { %233 = vrot.lane.b32.xlu1 %v224_v0, %s963_s16  ;;  %227 = vrot.lane.b32.xlu0 %v224_v0, %s964_s17  ;;  %v167_v3 = vld [vmem:[%s154_s20 + $0x8] sm:$0xff]  ;;  %v166_v4 = vld [vmem:[%s154_s20] sm:$0xff]  ;;  %vm192_vm0 = vcmp.lt.s32.totalorder %v1003_v12, 7  ;;  %vm202_vm1 = vcmp.lt.s32.totalorder %v1003_v12, 6 }
  0x10   : > { %229 = vrot.lane.b32.xlu2 %v225_v1, %s964_s17  ;;  %v999_v5 = vld [vmem:[%s154_s20 + $0x10] sm:$0xff] }
  0x17   : > { %237 = vrot.lane.b32.xlu1 %v226_v2, %s963_s16  ;;  %231 = vrot.lane.b32.xlu0 %v226_v2, %s964_s17 }
  0x18   : > { %235 = vrot.lane.b32.xlu2 %v225_v1, %s963_s16 }
  0x1f   : > { %171 = vrot.lane.b32.xlu1 %v167_v3, %s964_s17  ;;  %169 = vrot.lane.b32.xlu0 %v166_v4, %s964_s17 }
  0x20   : > { %175 = vrot.lane.b32.xlu2 %v166_v4, %s963_s16 }
  0x27   : > { %173 = vrot.lane.b32.xlu1 %v999_v5, %s964_s17  ;;  %177 = vrot.lane.b32.xlu0 %v167_v3, %s963_s16 }
  0x28   : > { %179 = vrot.lane.b32.xlu2 %v999_v5, %s963_s16 }
  0x6a   : > { %v230_v6 = vpop.permute.xlu2 %229 }
  0x6b   : > { %v240_v7 = vadd.f32 %v230_v6, %v225_v1  ;;  %v264_v15 = vrot.slane %v230_v6, 1 }
  0x72   : > { %v236_v9 = vpop.permute.xlu2 %235 }
  0x73   : > { %v243_v10 = vadd.f32 %v240_v7, %v236_v9 }
  0x75   : > { %v246_v18 = vrot.slane %v243_v10, 1  ;;  %v255_v21 = vrot.slane %v243_v10, 2 }
  0x7a   : > { %v176_v40 = vpop.permute.xlu2 %175 }
  0x81   : > { %v234_v11 = vpop.permute.xlu1 %233  ;;  %v228_v13 = vpop.permute.xlu0 %227 }
  0x82   : > { %v239_v14 = vadd.f32 %v228_v13, %v224_v0  ;;  %v263_v17 = vrot.slane %v228_v13, 1 }
  0x84   : > { %v242_v16 = vadd.f32 %v239_v14, %v234_v11  ;;  %v267_v22 = vsel %vm192_vm0, %v263_v17, %v264_v15 }
  0x85   : > { %v269_v29 = vmul.f32 9.0, %v267_v22 }
  0x86   : > { %v245_v19 = vrot.slane %v242_v16, 1  ;;  %v254_v20 = vrot.slane %v242_v16, 2 }
  0x88   : > { %v249_v23 = vsel %vm192_vm0, %v245_v19, %v246_v18  ;;  %v258_v27 = vsel %vm202_vm1, %v254_v20, %v255_v21 }
  0x89   : > { %v251_v24 = vadd.f32 %v249_v23, %v242_v16  ;;  %v238_v25 = vpop.permute.xlu1 %237  ;;  %v232_v26 = vpop.permute.xlu0 %231 }
  0x8a   : > { %v241_v28 = vadd.f32 %v232_v26, %v226_v2  ;;  %v265_v32 = vrot.slane %v232_v26, 1  ;;  %v180_v2 = vpop.permute.xlu2 %179 }
  0x8b   : > { %v260_v30 = vadd.f32 %v258_v27, %v251_v24 }
  0x8c   : > { %v244_v31 = vadd.f32 %v241_v28, %v238_v25  ;;  %v266_v38 = vsel %vm192_vm0, %v264_v15, %v265_v32  ;;  %v268_v39 = vsel %vm192_vm0, %v265_v32, %v263_v17 }
  0x8d   : > { %v1013_v33 = vsub.f32 %v260_v30, %v269_v29  ;;  %v270_v50 = vmul.f32 9.0, %v266_v38  ;;  %v271_v51 = vmul.f32 9.0, %v268_v39 }
  0x8e   : > { %v247_v34 = vrot.slane %v244_v31, 1  ;;  %v256_v35 = vrot.slane %v244_v31, 2 }
  0x8f   : > { %v295_v61 = vmul.f32 %v1013_v33, %v1013_v33 }
  0x90   : > { %v248_v36 = vsel %vm192_vm0, %v246_v18, %v247_v34  ;;  %v250_v37 = vsel %vm192_vm0, %v247_v34, %v245_v19  ;;  %v257_v45 = vsel %vm202_vm1, %v255_v21, %v256_v35  ;;  %v259_v46 = vsel %vm202_vm1, %v256_v35, %v254_v20 }
  0x91   : > { %v252_v41 = vadd.f32 %v248_v36, %v243_v10  ;;  %v253_v42 = vadd.f32 %v250_v37, %v244_v31  ;;  %v172_v43 = vpop.permute.xlu1 %171  ;;  %v170_v44 = vpop.permute.xlu0 %169  ;;  %v1036_v11 = vand.u32 4294901760, %v295_v61  ;;  %v1062_v35 = vand.u32 4294901760, %v1013_v33 }
  0x92   : > { %v181_v47 = vadd.f32 %v170_v44, %v166_v4  ;;  %v182_v54 = vadd.f32 %v172_v43, %v167_v3  ;;  %v210_v56 = vrot.slane %v172_v43, 1  ;;  %v209_v57 = vrot.slane %v170_v44, 1 }
  0x93   : > { %v261_v48 = vadd.f32 %v257_v45, %v252_v41  ;;  %v262_v49 = vadd.f32 %v259_v46, %v253_v42  ;;  %v347_v42 = vsub.f32 %v295_v61, %v1036_v11 }
  0x94   : > { %v184_v55 = vadd.f32 %v181_v47, %v176_v40  ;;  %v213_v4 = vsel %vm192_vm0, %v209_v57, %v210_v56 }
  0x95   : > { %v273_v52 = vsub.f32 %v261_v48, %v270_v50  ;;  %v274_v53 = vsub.f32 %v262_v49, %v271_v51  ;;  %v215_v13 = vmul.f32 9.0, %v213_v4  ;;  %v1079_v49 = vsub.f32 %v1013_v33, %v1062_v35 }
  0x96   : > { %v187_v62 = vrot.slane %v184_v55, 1  ;;  %v199_v63 = vrot.slane %v184_v55, 2  ;;  %v348_v33 = vand.u32 4294901760, %v347_v42 }
  0x97   : > { %v296_v58 = vmul.f32 %v273_v52, %v273_v52  ;;  %277 = vst [vmem:[#allocation3 + $0x10] sm:$0xff] %v274_v53  ;;  %v1042_v15 = vand.u32 4294901760, %v273_v52 }
  0x98   : > { %v349_v61 = vsub.f32 %v347_v42, %v348_v33 }
  0x99   : > { %v174_v59 = vpop.permute.xlu1 %173  ;;  %v178_v60 = vpop.permute.xlu0 %177  ;;  %v1032_v6 = vand.u32 4294901760, %v296_v58  ;;  %v1068_v37 = vsub.f32 %v273_v52, %v1042_v15 }
  0x9a   : > { %v183_v0 = vadd.f32 %v174_v59, %v999_v5  ;;  %v185_v1 = vadd.f32 %v182_v54, %v178_v60  ;;  %v211_v3 = vrot.slane %v174_v59, 1 }
  0x9b   : > { %v1045_v20 = vsub.f32 %v296_v58, %v1032_v6  ;;  %v522_v48 = vand.u32 4294901760, %v1068_v37  ;;  %v528_v58 = vand.u32 4294901760, %v1079_v49 }
  0x9c   : > { %v188_v7 = vrot.slane %v185_v1, 1  ;;  %v200_v8 = vrot.slane %v185_v1, 2  ;;  %v212_v9 = vsel %vm192_vm0, %v210_v56, %v211_v3  ;;  %v186_v10 = vadd.f32 %v183_v0, %v180_v2 }
  0x9d   : > { %v214_v21 = vsel %vm192_vm0, %v211_v3, %v209_v57  ;;  %v216_v22 = vmul.f32 9.0, %v212_v9  ;;  %v342_v47 = vand.u32 4294901760, %v1045_v20  ;;  %v523_v57 = vsub.f32 %v1068_v37, %v522_v48 }
  0x9e   : > { %v194_v5 = vsel %vm192_vm0, %v187_v62, %v188_v7  ;;  %v204_v14 = vsel %vm202_vm1, %v199_v63, %v200_v8  ;;  %v189_v17 = vrot.slane %v186_v10, 1  ;;  %v201_v18 = vrot.slane %v186_v10, 2  ;;  %v283_v19 = vld [vmem:[#allocation3 + $0x10] sm:$0x3] }
  0x9f   : > { %v196_v16 = vadd.f32 %v194_v5, %v184_v55  ;;  %v297_v23 = vmul.f32 %v283_v19, %v283_v19  ;;  %v1049_v24 = vand.u32 4294901760, %v283_v19  ;;  %v217_v38 = vmul.f32 9.0, %v214_v21 }
  0xa0   : > { %v193_v26 = vsel %vm192_vm0, %v188_v7, %v189_v17  ;;  %v195_v27 = vsel %vm192_vm0, %v189_v17, %v187_v62  ;;  %v203_v28 = vsel %vm202_vm1, %v200_v8, %v201_v18  ;;  %v205_v31 = vsel %vm202_vm1, %v201_v18, %v199_v63 }
  0xa1   : > { %v206_v25 = vadd.f32 %v204_v14, %v196_v16  ;;  %v197_v29 = vadd.f32 %v193_v26, %v185_v1  ;;  %v198_v30 = vadd.f32 %v195_v27, %v186_v10  ;;  %v1059_v32 = vand.u32 4294901760, %v297_v23 }
  0xa2   : > { %v1065_v36 = vsub.f32 %v283_v19, %v1049_v24  ;;  %v343_v55 = vsub.f32 %v1045_v20, %v342_v47  ;;  %v965_v62 = vmov 0.0   ;;  %v524_v63 = vand.u32 4294901760, %v523_v57 }
  0xa3   : > { %v218_v34 = vsub.f32 %v206_v25, %v215_v13  ;;  %v207_v39 = vadd.f32 %v203_v28, %v197_v29  ;;  %v208_v40 = vadd.f32 %v205_v31, %v198_v30  ;;  %312 = vmatpush.xpose.msra.mxu0 %v1059_v32  ;;  %396 = vmatpush.xpose.msra.mxu3 %v1059_v32  ;;  %v350_v7 = vand.u32 4294901760, %v349_v61 }
  0xa4   : > { %v335_v12 = vsub.f32 %v297_v23, %v1059_v32  ;;  %v516_v41 = vand.u32 4294901760, %v1065_v36  ;;  %v344_v60 = vand.u32 4294901760, %v343_v55  ;;  %v529_v1 = vsub.f32 %v1079_v49, %v528_v58 }
  0xa5   : > { %v284_v43 = vmul.f32 %v218_v34, %v218_v34  ;;  %v219_v44 = vsub.f32 %v207_v39, %v216_v22  ;;  %v220_v45 = vsub.f32 %v208_v40, %v217_v38  ;;  %v1086_v53 = vand.u32 4294901760, %v218_v34 }
  0xa6   : > { %371 = vmatpush.xpose.msra.mxu2 %v335_v12  ;;  %v336_v46 = vand.u32 4294901760, %v335_v12  ;;  %v517_v51 = vsub.f32 %v1065_v36, %v516_v41  ;;  %v530_v9 = vand.u32 4294901760, %v529_v1  ;;  %v966_v5 = vmov 1.0  }
  0xa7   : > { %287 = vadd.xlane.f32.xlu0 %v284_v43  ;;  %314 = vmatpush.xpose.msra.mxu0 %v1032_v6  ;;  %v285_v52 = vmul.f32 %v219_v44, %v219_v44  ;;  %223 = vst [vmem:[#allocation2 + $0x8] sm:$0xff] %v220_v45  ;;  %v1097_v59 = vsub.f32 %v218_v34, %v1086_v53  ;;  %v484_v2 = vand.u32 4294901760, %v219_v44 }
  0xa8   : > { %398 = vmatpush.xpose.msra.mxu3 %v1032_v6  ;;  %v337_v50 = vsub.f32 %v335_v12, %v336_v46  ;;  %v518_v56 = vand.u32 4294901760, %v517_v51 }
  0xa9   : > { %289 = vadd.xlane.f32.xlu1 %v285_v52  ;;  %v478_v3 = vand.u32 4294901760, %v1097_v59  ;;  %v485_v10 = vsub.f32 %v219_v44, %v484_v2 }
  0xaa   : > { %374 = vmatpush.xpose.msra.mxu2 %v1045_v20  ;;  %v338_v54 = vand.u32 4294901760, %v337_v50 }
  0xab   : > { %316 = vmatpush.xpose.msra.mxu0 %v1036_v11  ;;  %v479_v13 = vsub.f32 %v1097_v59, %v478_v3  ;;  %v486_v17 = vand.u32 4294901760, %v485_v10 }
  0xac   : > { %339 = vmatpush.xpose.msra.mxu1 %v338_v54  ;;  %400 = vmatpush.xpose.msra.mxu3 %v1036_v11 }
  0xad   : > { %v480_v16 = vand.u32 4294901760, %v479_v13  ;;  %v487_v18 = vsub.f32 %v485_v10, %v486_v17 }
  0xae   : > { %377 = vmatpush.xpose.msra.mxu2 %v347_v42  ;;  %317 = vmatmul.f32.vlgmr.msra.gmra.mxu0 %v965_v62  ;;  %v280_v0 = vld [vmem:[#allocation2 + $0x8] sm:$0x3] }
  0xaf   : > { %421 = vmatpush.xpose.msrb.mxu0 %v336_v46  ;;  %401 = vmatmul.f32.vlgmr.msra.gmra.mxu3 %v965_v62  ;;  %v286_v4 = vmul.f32 %v280_v0, %v280_v0  ;;  %v492_v14 = vand.u32 4294901760, %v280_v0 }
  0xb0   : > { %519 = vmatpush.xpose.msrb.mxu3 %v518_v56  ;;  %345 = vmatpush.xpose.msra.mxu1 %v344_v60 }
  0xb1   : > { %378 = vmatmul.f32.vlgmr.msra.gmra.mxu2 %v965_v62  ;;  %v292_v8 = vsel %vm291_vm2, %v286_v4, 0.0  ;;  %v493_v19 = vsub.f32 %v280_v0, %v492_v14 }
  0xb2   : > { %471 = vmatpush.xpose.msrb.mxu2 %v1049_v24  ;;  %293 = vadd.xlane.f32.xlu2 %v292_v8 }
  0xb3   : > { %425 = vmatpush.xpose.msrb.mxu0 %v342_v47  ;;  %v494_v20 = vand.u32 4294901760, %v493_v19 }
  0xb4   : > { %525 = vmatpush.xpose.msrb.mxu3 %v524_v63  ;;  %351 = vmatpush.xpose.msra.mxu1 %v350_v7 }
  0xb5   : > { %v495_v21 = vsub.f32 %v493_v19, %v494_v20 }
  0xb6   : > { %473 = vmatpush.xpose.msrb.mxu2 %v1042_v15 }
  0xb7   : > { %429 = vmatpush.xpose.msrb.mxu0 %v348_v33  ;;  %352 = vmatmul.f32.vlgmr.msra.gmra.mxu1 %v966_v5 }
  0xb8   : > { %448 = vmatpush.xpose.msrb.mxu1 %v1059_v32  ;;  %531 = vmatpush.xpose.msrb.mxu3 %v530_v9 }
  0xba   : > { %475 = vmatpush.xpose.msrb.mxu2 %v1062_v35  ;;  %430 = vmatmul.f32.vlgmr.msrb.gmra.mxu0 %v966_v5 }
  0xbb   : > { %560 = vmatpush.xpose.msra.mxu0 %v1065_v36  ;;  %533 = vmatmul.f32.vlgmr.msrb.gmra.mxu3 %v1086_v53 }
  0xbc   : > { %673 = vmatpush.xpose.msra.mxu3 %v1049_v24  ;;  %450 = vmatpush.xpose.msrb.mxu1 %v1032_v6  ;;  %v488_v6 = vand.u32 4294901760, %v487_v18 }
  0xbd   : > { %481 = vmatmul.f32.vlgmr.msrb.gmra.mxu2 %v480_v16 }
  0xbe   : > { %637 = vmatpush.xpose.msra.mxu2 %v516_v41 }
  0xbf   : > { %563 = vmatpush.xpose.msra.mxu0 %v1068_v37 }
  0xc0   : > { %675 = vmatpush.xpose.msra.mxu3 %v1042_v15  ;;  %452 = vmatpush.xpose.msrb.mxu1 %v1036_v11  ;;  %v496_v11 = vand.u32 4294901760, %v495_v21 }
  0xc2   : > { %641 = vmatpush.xpose.msra.mxu2 %v522_v48 }
  0xc3   : > { %566 = vmatpush.xpose.msra.mxu0 %v1079_v49  ;;  %453 = vmatmul.f32.vlgmr.msrb.gmra.mxu1 %v966_v5 }
  0xc4   : > { %597 = vmatpush.xpose.msra.mxu1 %v1049_v24  ;;  %677 = vmatpush.xpose.msra.mxu3 %v1062_v35 }
  0xc5   : > { %537 = vmatmul.f32.gmra.mxu3 %v484_v2  ;;  %489 = vmatmul.f32.gmra.mxu2 %v488_v6 }
  0xc6   : > { %645 = vmatpush.xpose.msra.mxu2 %v528_v58  ;;  %569 = vmatmul.f32.vlgmr.msra.gmra.mxu0 %v1097_v59 }
  0xc8   : > { %599 = vmatpush.xpose.msra.mxu1 %v1042_v15 }
  0xcc   : > { %601 = vmatpush.xpose.msra.mxu1 %v1062_v35 }
  0xcd   : > { %541 = vmatmul.f32.gmra.mxu3 %v492_v14  ;;  %497 = vmatmul.f32.gmra.mxu2 %v496_v11 }
  0xce   : > { %574 = vmatmul.f32.gmra.mxu0 %v485_v10 }
  0xcf   : > { %605 = vmatmul.f32.vlgmr.msra.gmra.mxu1 %v478_v3 }
  0xd5   : > { %679 = vmatmul.f32.vlgmr.msra.gmra.mxu3 %v1086_v53  ;;  %647 = vmatmul.f32.vlgmr.msra.gmra.mxu2 %v1086_v53 }
  0xd6   : > { %579 = vmatmul.f32.gmra.mxu0 %v493_v19 }
  0xd7   : > { %611 = vmatmul.f32.gmra.mxu1 %v486_v17 }
  0xdd   : > { %683 = vmatmul.f32.gmra.mxu3 %v484_v2  ;;  %651 = vmatmul.f32.gmra.mxu2 %v484_v2 }
  0xdf   : > { %617 = vmatmul.f32.gmra.mxu1 %v494_v20 }
  0xe5   : > { %687 = vmatmul.f32.gmra.mxu3 %v492_v14  ;;  %655 = vmatmul.f32.gmra.mxu2 %v492_v14 }
 0x11a   : > { %v288_v51 = vpop.xlane.xlu0 %287 }
 0x11c   : > { %v290_v0 = vpop.xlane.xlu1 %289 }
 0x125   : > { %v294_v19 = vpop.xlane.xlu2 %293 }
 0x12b   : > { %v318_v23 = vpop.f32.mrf.mxu0 }
 0x132   : > { %v402_v15 = vpop.f32.mrf.mxu3 }
 0x134   : > { %v379_v22 = vpop.f32.mrf.mxu2  ;;  %v353_v24 = vpop.f32.mrf.mxu1 }
 0x135   : > { %v354_v28 = vadd.f32 %v353_v24, %v318_v23 }
 0x137   : > { %v431_v27 = vpop.f32.mrf.mxu0  ;;  %v380_v32 = vadd.f32 %v379_v22, %v354_v28 }
 0x139   : > { %v403_v34 = vadd.f32 %v402_v15, %v380_v32 }
 0x13b   : > { %v432_v39 = vadd.f32 %v431_v27, %v403_v34 }
 0x13e   : > { %v534_v25 = vpop.f32.mrf.mxu3 }
 0x140   : > { %v482_v26 = vpop.f32.mrf.mxu2  ;;  %v454_v29 = vpop.f32.mrf.mxu1 }
 0x141   : > { %v535_v40 = vadd.f32 %v534_v25, %v482_v26  ;;  %v455_v12 = vadd.f32 %v454_v29, %v432_v39 }
 0x143   : > { %v570_v35 = vpop.f32.mrf.mxu0  ;;  %v691_v46 = vperm.slane %v455_v12, 0 }
 0x144   : > { %v571_v41 = vadd.f32 %v570_v35, %v535_v40 }
 0x145   : > { %v692_v52 = vadd.f32 %v691_v46, %v288_v51  ;;  %v693_v2 = vadd.f32 %v691_v46, %v290_v0  ;;  %v694_v6 = vadd.f32 %v691_v46, %v294_v19 }
 0x148   : > { %v538_v30 = vpop.f32.mrf.mxu3  ;;  %v490_v31 = vpop.f32.mrf.mxu2 }
 0x149   : > { %v539_v47 = vadd.f32 %v538_v30, %v490_v31 }
 0x14b   : > { %v575_v44 = vpop.f32.mrf.mxu0 }
 0x14c   : > { %v606_v37 = vpop.f32.mrf.mxu1  ;;  %v576_v53 = vadd.f32 %v575_v44, %v539_v47 }
 0x14d   : > { %v607_v43 = vadd.f32 %v606_v37, %v571_v41 }
 0x150   : > { %v542_v36 = vpop.f32.mrf.mxu3  ;;  %v498_v38 = vpop.f32.mrf.mxu2 }
 0x151   : > { %v543_v58 = vadd.f32 %v542_v36, %v498_v38 }
 0x153   : > { %v580_v61 = vpop.f32.mrf.mxu0 }
 0x154   : > { %v612_v49 = vpop.f32.mrf.mxu1  ;;  %v581_v4 = vadd.f32 %v580_v61, %v543_v58 }
 0x155   : > { %v613_v55 = vadd.f32 %v612_v49, %v576_v53 }
 0x158   : > { %v680_v42 = vpop.f32.mrf.mxu3  ;;  %v648_v45 = vpop.f32.mrf.mxu2 }
 0x159   : > { %v649_v48 = vadd.f32 %v648_v45, %v607_v43 }
 0x15b   : > { %v681_v50 = vadd.f32 %v680_v42, %v649_v48 }
 0x15c   : > { %v618_v1 = vpop.f32.mrf.mxu1 }
 0x15d   : > { %v695_v54 = vmul.f32 2.0, %v681_v50  ;;  %v619_v8 = vadd.f32 %v618_v1, %v581_v4 }
 0x15f   : > { %v698_v33 = vsub.f32 %v692_v52, %v695_v54 }
 0x160   : > { %v684_v56 = vpop.f32.mrf.mxu3  ;;  %v652_v57 = vpop.f32.mrf.mxu2 }
 0x161   : > { %v1125_v59 = vmax.f32 %v698_v33, 0.0  ;;  %v653_v60 = vadd.f32 %v652_v57, %v613_v55 }
 0x163   : > { %v685_v62 = vadd.f32 %v684_v56, %v653_v60  ;;  %v704_v63 = vsub.f32 0.0, %v1125_v59 }
 0x165   : > { %v696_v3 = vmul.f32 2.0, %v685_v62  ;;  %v707_v7 = vmul.f32 100.0, %v704_v63 }
 0x167   : > { %v699_v9 = vsub.f32 %v693_v2, %v696_v3  ;;  %v711_v10 = vsel %vm710_vm3, %v707_v7, -inf }
 0x168   : > { %v656_v13 = vpop.f32.mrf.mxu2  ;;  %712 = vmax.xlane.f32.xlu2 %v711_v10  ;;  %v688_v16 = vpop.f32.mrf.mxu3 }
 0x169   : > { %v1129_v5 = vmax.f32 %v699_v9, 0.0  ;;  %v657_v14 = vadd.f32 %v656_v13, %v619_v8 }
 0x16b   : > { %v689_v17 = vadd.f32 %v688_v16, %v657_v14  ;;  %v705_v18 = vsub.f32 0.0, %v1129_v5 }
 0x16d   : > { %v697_v20 = vmul.f32 2.0, %v689_v17  ;;  %v708_v21 = vmul.f32 100.0, %v705_v18 }
 0x16f   : > { %v700_v11 = vsub.f32 %v694_v6, %v697_v20  ;;  %v714_v15 = vsel %vm710_vm3, %v708_v21, -inf }
 0x170   : > { %715 = vmax.xlane.f32.xlu0 %v714_v15 }
 0x171   : > { %v1133_v22 = vmax.f32 %v700_v11, 0.0 }
 0x173   : > { %v706_v23 = vsub.f32 0.0, %v1133_v22 }
 0x175   : > { %v709_v24 = vmul.f32 100.0, %v706_v23 }
 0x177   : > { %v718_v25 = vsel %vm717_vm4, %v709_v24, -inf }
 0x178   : > { %719 = vmax.xlane.f32.xlu1 %v718_v25 }
 0x1db   : > { %v713_v26 = vpop.xlane.xlu2 %712 }
 0x1dc   : > { %v721_v27 = vsub.f32 %v707_v7, %v713_v26 }
 0x1de   : > { %v724_v28 = vmul.f32 1.442695, %v721_v27 }
 0x1e0   : > { %929 = vpow2.f32 %v724_v28 }
 0x1e3   : > { %v716_v29 = vpop.xlane.xlu0 %715 }
 0x1e4   : > { %v722_v30 = vsub.f32 %v708_v21, %v716_v29 }
 0x1e6   : > { %v930_v31 = vpop.eup %929  ;;  %v726_v32 = vmul.f32 1.442695, %v722_v30 }
 0x1e7   : > { %v730_v34 = vsel %vm710_vm3, %v930_v31, 0.0 }
 0x1e8   : > { %931 = vpow2.f32 %v726_v32  ;;  %731 = vadd.xlane.f32.xlu2 %v730_v34 }
 0x1eb   : > { %v720_v35 = vpop.xlane.xlu1 %719 }
 0x1ec   : > { %v723_v36 = vsub.f32 %v709_v24, %v720_v35 }
 0x1ee   : > { %v932_v37 = vpop.eup %931  ;;  %v728_v38 = vmul.f32 1.442695, %v723_v36 }
 0x1ef   : > { %v733_v39 = vsel %vm710_vm3, %v932_v37, 0.0 }
 0x1f0   : > { %933 = vpow2.f32 %v728_v38  ;;  %734 = vadd.xlane.f32.xlu0 %v733_v39 }
 0x1f6   : > { %v934_v40 = vpop.eup %933 }
 0x1f7   : > { %v736_v12 = vsel %vm717_vm4, %v934_v40, 0.0 }
 0x1f8   : > { %737 = vadd.xlane.f32.xlu1 %v736_v12 }
 0x25b   : > { %v732_v41 = vpop.xlane.xlu2 %731 }
 0x25c   : > { %935 = vlog2.f32 %v732_v41 }
 0x262   : > { %v936_v42 = vpop.eup %935 }
 0x263   : > { %v735_v43 = vpop.xlane.xlu0 %734  ;;  %v740_v44 = vmul.f32 0.6931472, %v936_v42 }
 0x264   : > { %937 = vlog2.f32 %v735_v43 }
 0x265   : > { %v745_v45 = vadd.f32 %v740_v44, %v713_v26 }
 0x267   : > { %v748_v49 = vsub.f32 -2.8903716, %v745_v45 }
 0x269   : > { %v751_v52 = vmul.f32 0.01, %v748_v49 }
 0x26a   : > { %v938_v46 = vpop.eup %937 }
 0x26b   : > { %v742_v47 = vmul.f32 0.6931472, %v938_v46  ;;  %v738_v48 = vpop.xlane.xlu1 %737  ;;  %v754_v56 = vsub.f32 %v751_v52, %v1125_v59 }
 0x26c   : > { %939 = vlog2.f32 %v738_v48 }
 0x26d   : > { %v746_v50 = vadd.f32 %v742_v47, %v716_v29  ;;  %v757_v61 = vmul.f32 100.0, %v754_v56 }
 0x26f   : > { %v749_v51 = vsub.f32 -2.8903716, %v746_v50  ;;  %v760_v1 = vsel %vm710_vm3, %v757_v61, -inf }
 0x271   : > { %v752_v53 = vmul.f32 0.01, %v749_v51 }
 0x272   : > { %v940_v54 = vpop.eup %939 }
 0x273   : > { %v755_v55 = vsub.f32 %v752_v53, %v1129_v5  ;;  %v744_v33 = vmul.f32 0.6931472, %v940_v54 }
 0x275   : > { %v747_v57 = vadd.f32 %v744_v33, %v720_v35  ;;  %v758_v58 = vmul.f32 100.0, %v755_v55 }
 0x277   : > { %v750_v60 = vsub.f32 -2.8903716, %v747_v57  ;;  %v761_v63 = vsel %vm710_vm3, %v758_v58, -inf }
 0x278   : > { %v763_v4 = vmax.f32 %v760_v1, %v761_v63 }
 0x279   : > { %v753_v62 = vmul.f32 0.01, %v750_v60 }
 0x27b   : > { %v756_v0 = vsub.f32 %v753_v62, %v1133_v22 }
 0x27d   : > { %v759_v2 = vmul.f32 100.0, %v756_v0 }
 0x27f   : > { %v762_v3 = vsel %vm717_vm4, %v759_v2, -inf }
 0x280   : > { %v764_v7 = vmax.f32 %v763_v4, %v762_v3 }
 0x282   : > { %v765_v8 = vrot.slane %v764_v7, 4 }
 0x284   : > { %v766_v9 = vmax.f32 %v764_v7, %v765_v8 }
 0x286   : > { %v767_v10 = vrot.slane %v766_v9, 2 }
 0x288   : > { %v768_v13 = vmax.f32 %v766_v9, %v767_v10 }
 0x28a   : > { %v769_v14 = vrot.slane %v768_v13, 1 }
 0x28c   : > { %v770_v16 = vmax.f32 %v768_v13, %v769_v14 }
 0x28e   : > { %v771_v17 = vsub.f32 %v757_v61, %v770_v16  ;;  %v772_v18 = vsub.f32 %v758_v58, %v770_v16  ;;  %v773_v19 = vsub.f32 %v759_v2, %v770_v16 }
 0x290   : > { %v774_v6 = vmul.f32 1.442695, %v771_v17  ;;  %v776_v20 = vmul.f32 1.442695, %v772_v18  ;;  %v778_v21 = vmul.f32 1.442695, %v773_v19 }
 0x292   : > { %941 = vpow2.f32 %v774_v6 }
 0x293   : > { %943 = vpow2.f32 %v776_v20 }
 0x294   : > { %945 = vpow2.f32 %v778_v21 }
 0x298   : > { %v942_v11 = vpop.eup %941 }
 0x299   : > { %v944_v15 = vpop.eup %943  ;;  %v780_v23 = vsel %vm710_vm3, %v942_v11, 0.0 }
 0x29a   : > { %v946_v24 = vpop.eup %945  ;;  %v781_v25 = vsel %vm710_vm3, %v944_v15, 0.0 }
 0x29b   : > { %v782_v26 = vadd.f32 %v781_v25, %v780_v23  ;;  %v783_v27 = vsel %vm717_vm4, %v946_v24, 0.0 }
 0x29d   : > { %v784_v28 = vadd.f32 %v783_v27, %v782_v26 }
 0x29f   : > { %v785_v29 = vrot.slane %v784_v28, 4 }
 0x2a1   : > { %v786_v30 = vadd.f32 %v785_v29, %v784_v28 }
 0x2a3   : > { %v787_v31 = vrot.slane %v786_v30, 2 }
 0x2a5   : > { %v788_v32 = vadd.f32 %v787_v31, %v786_v30 }
 0x2a7   : > { %v789_v34 = vrot.slane %v788_v32, 1 }
 0x2a9   : > { %v790_v35 = vadd.f32 %v789_v34, %v788_v32 }
 0x2ab   : > { %947 = vlog2.f32 %v790_v35 }
 0x2b1   : > { %v948_v36 = vpop.eup %947 }
 0x2b2   : > { %v792_v37 = vmul.f32 0.6931472, %v948_v36 }
 0x2b4   : > { %v793_v38 = vadd.f32 %v792_v37, %v770_v16 }
 0x2b6   : > { %v794_v39 = vsub.f32 -2.8903716, %v793_v38 }
 0x2b8   : > { %v795_v40 = vmul.f32 0.01, %v794_v39 }
 0x2ba   : > { %v796_v12 = vadd.f32 %v795_v40, %v751_v52  ;;  %v797_v41 = vadd.f32 %v795_v40, %v752_v53  ;;  %v798_v42 = vadd.f32 %v795_v40, %v753_v62 }
 0x2bc   : > { %v799_v43 = vsub.f32 %v796_v12, %v1125_v59  ;;  %v800_v44 = vsub.f32 %v797_v41, %v1129_v5  ;;  %v801_v45 = vsub.f32 %v798_v42, %v1133_v22 }
 0x2be   : > { %v802_v46 = vmul.f32 100.0, %v799_v43  ;;  %v803_v47 = vmul.f32 100.0, %v800_v44  ;;  %v804_v48 = vmul.f32 100.0, %v801_v45 }
 0x2c0   : > { %v805_v49 = vmul.f32 1.442695, %v802_v46  ;;  %v807_v50 = vmul.f32 1.442695, %v803_v47  ;;  %v809_v51 = vmul.f32 1.442695, %v804_v48 }
 0x2c2   : > { %949 = vpow2.f32 %v805_v49 }
 0x2c3   : > { %951 = vpow2.f32 %v807_v50 }
 0x2c4   : > { %953 = vpow2.f32 %v809_v51 }
 0x2c8   : > { %v950_v54 = vpop.eup %949 }
 0x2c9   : > { %v952_v55 = vpop.eup %951  ;;  %v811_v52 = vmul.f32 %v950_v54, %v1125_v59 }
 0x2ca   : > { %v954_v53 = vpop.eup %953  ;;  %v812_v33 = vmul.f32 %v952_v55, %v1129_v5 }
 0x2cb   : > { %v813_v56 = vmul.f32 %v954_v53, %v1133_v22  ;;  %v814_v57 = vsel %vm710_vm3, %v811_v52, 0.0 }
 0x2cc   : > { %v815_v58 = vsel %vm710_vm3, %v812_v33, 0.0 }
 0x2cd   : > { %v816_v60 = vadd.f32 %v815_v58, %v814_v57  ;;  %v817_v61 = vsel %vm717_vm4, %v813_v56, 0.0 }
 0x2cf   : > { %v818_v62 = vadd.f32 %v817_v61, %v816_v60 }
 0x2d1   : > { %v819_v63 = vrot.slane %v818_v62, 4 }
 0x2d3   : > { %v820_v0 = vadd.f32 %v819_v63, %v818_v62 }
 0x2d5   : > { %v821_v1 = vrot.slane %v820_v0, 2 }
 0x2d7   : > { %v822_v2 = vadd.f32 %v821_v1, %v820_v0 }
 0x2d9   : > { %v823_v59 = vrot.slane %v822_v2, 1 }
 0x2db   : > { %v824_v4 = vadd.f32 %v823_v59, %v822_v2 }
 0x2dd   : > { %v827_v5 = vsel %vm826_vm5, %v824_v4, 0.0 }
 0x2de   : > { %828 = vadd.xlane.f32.xlu2 %v827_v5 }
 0x351   : > { %v829_v22 = vpop.xlane.xlu2 %828 }
 0x352   : > { %v830_v3 = vrot.slane %v829_v22, 4 }
 0x354   : > { %v831_v7 = vadd.f32 %v830_v3, %v829_v22 }
 0x356   : > { %v832_v8 = vrot.slane %v831_v7, 2 }
 0x358   : > { %v833_v9 = vadd.f32 %v832_v8, %v831_v7 }
 0x35a   : > { %v834_v10 = vrot.slane %v833_v9, 1 }
 0x35c   : > { %v835_v13 = vadd.f32 %v834_v10, %v833_v9 }
 0x35e   : > { %915 = vpush %v835_v13 }
 0x38f   : > { %s916_s25 = spop %915 }
 0x390   : > { %v837_v14 = vstv %s916_s25 }
 0x391   : > { %839 = vst [vmem:[%s165_s24] sm:$0xff] %v837_v14 }
 0x392 PF: > { %s12_s9 = sadd.s32 1, %s961_s9  }
 0x393   : > { %p9_p5 = scmp.ge.s32.totalorder %s12_s9, 4  }
 0x395   :  { %11 = sbr.rel (!%p9_p5) target bundleno = 1 (0x1), region = 61 }

</bundles_post_ra>
